<compile_context>
chip_gen: v5e
topology: v5e:2x2
jax: 0.10.0
libtpu: 0.0.40
codegen_flags: <defaults>
</compile_context>

<pallas_src>
import functools

import jax
import jax.numpy as jnp
from jax import lax
from jax.experimental import pallas as pl
from jax.experimental.pallas import tpu as pltpu


def _pair(v):
    if isinstance(v, (tuple, list)):
        return int(v[0]), int(v[1])
    return int(v), int(v)


def _round_up(a, b):
    return (a + b - 1) // b * b


def _make_kernel(tap_offsets, tm, win):
    """tap_offsets: static flat shifts kh*Wp + kw, one per (kh, kw) tap."""

    def kernel(w_ref, b_ref, x_hbm, o_ref, win_ref, sem):
        n = pl.program_id(0)
        m = pl.program_id(1)
        start = pl.multiple_of(m * tm, 128)

        # One strided DMA: the (Cin, win) flat window for this batch & tile.
        cp = pltpu.make_async_copy(
            x_hbm.at[n, :, pl.ds(start, win)], win_ref, sem)
        cp.start()
        cp.wait()

        # Tap accumulation: kH*kW small MXU matmuls, f32 accumulate.
        acc = None
        for t, off in enumerate(tap_offsets):
            rhs = win_ref[:, off:off + tm]                     # (Cin, tm) bf16
            part = jnp.dot(w_ref[t], rhs,
                           preferred_element_type=jnp.float32)  # (Cout, tm)
            acc = part if acc is None else acc + part

        o_ref[...] = (acc + b_ref[...]).astype(o_ref.dtype)

    return kernel


@functools.partial(
    jax.jit,
    static_argnames=("stride", "padding", "output_padding", "block_m"))
def conv_upsample_forward(x_nchw, weight, bias, *, stride, padding,
                          output_padding, block_m=512):
    """ConvTranspose2d forward (output_size=None).

    x_nchw: (N, Cin, H, W) float32
    weight: (Cin, Cout, kH, kW) float32  (PyTorch ConvTranspose2d layout)
    bias:   (Cout,) float32 or None
    returns (N, Cout, Hout, Wout) float32
    """
    N, Cin, H, W = x_nchw.shape
    Cin_w, Cout, kH, kW = weight.shape
    assert Cin_w == Cin, (Cin_w, Cin)
    sH, sW = _pair(stride)
    pH, pW = _pair(padding)
    opH, opW = _pair(output_padding)
    if opH >= sH or opW >= sW:
        raise ValueError("output_padding must be smaller than stride")

    Hout = (H - 1) * sH - 2 * pH + kH + opH
    Wout = (W - 1) * sW - 2 * pW + kW + opW
    Hp = Hout + kH - 1
    Wp = Wout + kW - 1

    # ---- wrapper glue (bf16, stays NCHW, no transposes, no im2col) ----
    x = x_nchw.astype(jnp.bfloat16)
    zero = jnp.array(0, jnp.bfloat16)
    # interior (zero) dilation by the stride
    x_dil = lax.pad(x, zero,
                    ((0, 0, 0), (0, 0, 0), (0, 0, sH - 1), (0, 0, sW - 1)))
    # edge padding; lax.pad handles negative pads (padding > k-1) by cropping
    plH, phH = kH - 1 - pH, kH - 1 - pH + opH
    plW, phW = kW - 1 - pW, kW - 1 - pW + opW
    x_pad = lax.pad(x_dil, zero,
                    ((0, 0, 0), (0, 0, 0), (plH, phH, 0), (plW, phW, 0)))
    x_flat = x_pad.reshape(N, Cin, Hp * Wp)          # free reshape, bf16

    # "wide" output: one value per flat position h*Wp + w, w in [0, Wp)
    M_wide = Hout * Wp
    halo = (kH - 1) * Wp + (kW - 1)

    # --- tile sizing: lane-dense (mult of 128), >=2 tiles, VMEM-bounded ---
    tm = min(int(block_m), _round_up(M_wide, 128))
    tm = max(128, _round_up(tm, 128))
    if N * pl.cdiv(M_wide, tm) < 2 and M_wide > 128:
        tm = max(128, _round_up(-(-M_wide // 2), 128))   # keep both TCs busy

    def footprint(tm_):
        win_ = _round_up(tm_ + halo, 128)
        w_b = kH * kW * Cout * Cin * 2                  # resident weights
        in_b = Cin * win_ * 2                           # input window scratch
        out_b = 2 * Cout * tm_ * 4                      # pipelined out blocks
        return w_b + in_b + out_b + (1 << 20)           # + slack

    budget = 28 * (1 << 20)                             # fits v7x / v5e too
    while tm > 128 and footprint(tm) > budget:
        tm -= 128

    win = _round_up(tm + halo, 128)
    grid_m = pl.cdiv(M_wide, tm)
    M_pad = grid_m * tm
    Lp = M_pad + (win - tm)                             # last DMA in-bounds
    x_flat = jnp.pad(x_flat, ((0, 0), (0, 0), (0, Lp - Hp * Wp)))

    # spatially flipped weights as (kH*kW, Cout, Cin) bf16
    wf = weight[:, :, ::-1, ::-1]                       # (Cin,Cout,kH,kW)
    w_mat = (jnp.transpose(wf, (2, 3, 1, 0))            # (kH,kW,Cout,Cin)
             .reshape(kH * kW, Cout, Cin).astype(jnp.bfloat16))
    b_col = (bias if bias is not None else jnp.zeros((Cout,), jnp.float32))
    b_col = b_col.astype(jnp.float32).reshape(Cout, 1)

    tap_offsets = tuple(kh * Wp + kw for kh in range(kH) for kw in range(kW))
    kernel = _make_kernel(tap_offsets, tm, win)

    vmem_limit = int(min(48 * (1 << 20),
                         max(32 * (1 << 20), 3 * footprint(tm))))

    out_wide = pl.pallas_call(
        kernel,
        out_shape=jax.ShapeDtypeStruct((N, Cout, M_pad), jnp.float32),
        grid_spec=pltpu.PrefetchScalarGridSpec(
            num_scalar_prefetch=0,
            grid=(N, grid_m),
            in_specs=[
                # resident, VMEM: flipped weights and bias
                pl.BlockSpec((kH * kW, Cout, Cin), lambda n, m: (0, 0, 0)),
                pl.BlockSpec((Cout, 1), lambda n, m: (0, 0)),
                # dilated/padded input stays in HBM; manual windowed DMA
                pl.BlockSpec(memory_space=pl.ANY),
            ],
            out_specs=pl.BlockSpec((None, Cout, tm), lambda n, m: (n, 0, m)),
            scratch_shapes=[
                pltpu.VMEM((Cin, win), jnp.bfloat16),   # input window
                pltpu.SemaphoreType.DMA(()),
            ],
        ),
        compiler_params=pltpu.CompilerParams(
            dimension_semantics=("parallel", "parallel"),
            vmem_limit_bytes=vmem_limit),
    )(w_mat, b_col, x_flat)

    # drop the M-pad tail and the kW-1 garbage columns per row -> NCHW
    out = out_wide[:, :, :M_wide].reshape(N, Cout, Hout, Wp)[..., :Wout]
    return out


if __name__ == "__main__":
    # ConvUpsample(in_channels=4, out_channels=8, kernel_size=3, stride=2,
    #              padding=1, output_padding=1, bias=True), output_size=None
    N, Cin, H, W = 2, 4, 16, 16
    Cout, ksz, stride, pad, opad = 8, 3, 2, 1, 1

    key = jax.random.PRNGKey(0)
    k1, k2, k3 = jax.random.split(key, 3)
    x = jax.random.normal(k1, (N, Cin, H, W), jnp.float32)
    weight = jax.random.normal(k2, (Cin, Cout, ksz, ksz), jnp.float32) * 0.1
    bias = jax.random.normal(k3, (Cout,), jnp.float32) * 0.1

    out = conv_upsample_forward(x, weight, bias, stride=stride,
                                padding=pad, output_padding=opad)
    out = jax.block_until_ready(out)

    # pure-JAX reference: transposed conv == conv with lhs_dilation + flipped
    # weights, on bf16-rounded inputs (matching the kernel's bf16 stream /
    # f32-accumulate numerics), at HIGHEST precision.
    Hout = (H - 1) * stride - 2 * pad + ksz + opad
    Wout = (W - 1) * stride - 2 * pad + ksz + opad
    x_bf = x.astype(jnp.bfloat16).astype(jnp.float32)
    w_bf = weight.astype(jnp.bfloat16).astype(jnp.float32)
    x_nhwc = jnp.transpose(x_bf, (0, 2, 3, 1))
    w_hwio = jnp.transpose(w_bf, (2, 3, 0, 1))[::-1, ::-1, :, :]
    pad_lo = ksz - 1 - pad
    pad_hi = ksz - 1 - pad + opad
    ref_nhwc = lax.conv_general_dilated(
        x_nhwc, w_hwio, window_strides=(1, 1),
        padding=((pad_lo, pad_hi), (pad_lo, pad_hi)),
        lhs_dilation=(stride, stride),
        dimension_numbers=("NHWC", "HWIO", "NHWC"),
        precision=lax.Precision.HIGHEST,
    ) + bias.reshape(1, 1, 1, Cout)
    ref = jnp.transpose(ref_nhwc, (0, 3, 1, 2))

    assert out.shape == (N, Cout, Hout, Wout), out.shape
    max_err = float(jnp.max(jnp.abs(out - ref)))
    assert jnp.allclose(out, ref, atol=2e-3, rtol=2e-3), max_err
    print("KERNEL_OK")
</pallas_src>

<mosaic_0001>
module attributes {stable_mosaic.version = 11 : i64} {
  func.func @kernel(%arg0: i32, %arg1: i32, %arg2: memref<9x8x4xbf16, #tpu.memory_space<vmem>>, %arg3: memref<8x1xf32, #tpu.memory_space<vmem>>, %arg4: memref<2x4x1664xbf16, #tpu.memory_space<any>>, %arg5: memref<1x8x512xf32, #tpu.memory_space<vmem>>, %arg6: memref<4x640xbf16, #tpu.memory_space<vmem>>, %arg7: memref<!tpu.dma_semaphore, #tpu.memory_space<semaphore_mem>>) attributes {dimension_semantics = [#tpu.dimension_semantics<parallel>, #tpu.dimension_semantics<parallel>], iteration_bounds = array<i64: 2, 3>, scalar_prefetch = 0 : i64, scratch_operands = 2 : i64, tpu.core_type = #tpu.core_type<tc>, window_params = [{pipeline_mode = #tpu.pipeline_mode<synchronous>, transform_indices = @transform_0, window_bounds = array<i64: 9, 8, 4>}, {pipeline_mode = #tpu.pipeline_mode<synchronous>, transform_indices = @transform_1, window_bounds = array<i64: 8, 1>}, {}, {transform_indices = @transform_3, window_bounds = array<i64: 1, 8, 512>}]} {
    %c512_i32 = arith.constant 512 : i32
    %0 = arith.muli %arg1, %c512_i32 : i32
    %1 = tpu.assume_multiple %0, 128 : i32
    %c0_i32 = arith.constant 0 : i32
    %2 = tpu.memref_slice %arg4[%arg0, %c0_i32, %1] : memref<2x4x1664xbf16, #tpu.memory_space<any>> -> memref<1x4x640xbf16, #tpu.memory_space<any>>
    %3 = tpu.memref_squeeze %2 : memref<1x4x640xbf16, #tpu.memory_space<any>> -> memref<4x640xbf16, #tpu.memory_space<any>>
    tpu.enqueue_dma source(%3 : memref<4x640xbf16, #tpu.memory_space<any>>) target(%arg6 : memref<4x640xbf16, #tpu.memory_space<vmem>>) target_semaphore(%arg7 : memref<!tpu.dma_semaphore, #tpu.memory_space<semaphore_mem>>)
    %c0_i32_0 = arith.constant 0 : i32
    %4 = tpu.memref_slice %arg4[%arg0, %c0_i32_0, %1] : memref<2x4x1664xbf16, #tpu.memory_space<any>> -> memref<1x4x640xbf16, #tpu.memory_space<any>>
    %5 = tpu.memref_squeeze %4 : memref<1x4x640xbf16, #tpu.memory_space<any>> -> memref<4x640xbf16, #tpu.memory_space<any>>
    tpu.wait_dma2 semaphore(%arg7 : memref<!tpu.dma_semaphore, #tpu.memory_space<semaphore_mem>>) src(%5 : memref<4x640xbf16, #tpu.memory_space<any>>) dst(%arg6 : memref<4x640xbf16, #tpu.memory_space<vmem>>)
    %c0 = arith.constant 0 : index
    %c0_1 = arith.constant 0 : index
    %6 = vector.load %arg6[%c0, %c0_1] : memref<4x640xbf16, #tpu.memory_space<vmem>>, vector<4x512xbf16>
    %c0_2 = arith.constant 0 : index
    %c0_3 = arith.constant 0 : index
    %c0_4 = arith.constant 0 : index
    %7 = vector.load %arg2[%c0_2, %c0_3, %c0_4] : memref<9x8x4xbf16, #tpu.memory_space<vmem>>, vector<1x8x4xbf16>
    %8 = vector.shape_cast %7 : vector<1x8x4xbf16> to vector<8x4xbf16>
    %cst = arith.constant dense<0.000000e+00> : vector<8x512xf32>
    %9 = tpu.matmul %8, %6, %cst {dimension_numbers = #tpu.dot_dimension_numbers<[1], [0], [0], [1], [0, 0, 1, 1], [], []>} : vector<8x4xbf16>, vector<4x512xbf16>, vector<8x512xf32> -> vector<8x512xf32>
    %c0_5 = arith.constant 0 : index
    %c1 = arith.constant 1 : index
    %10 = vector.load %arg6[%c0_5, %c1] : memref<4x640xbf16, #tpu.memory_space<vmem>>, vector<4x512xbf16>
    %c1_6 = arith.constant 1 : index
    %c0_7 = arith.constant 0 : index
    %c0_8 = arith.constant 0 : index
    %11 = vector.load %arg2[%c1_6, %c0_7, %c0_8] : memref<9x8x4xbf16, #tpu.memory_space<vmem>>, vector<1x8x4xbf16>
    %12 = vector.shape_cast %11 : vector<1x8x4xbf16> to vector<8x4xbf16>
    %cst_9 = arith.constant dense<0.000000e+00> : vector<8x512xf32>
    %13 = tpu.matmul %12, %10, %cst_9 {dimension_numbers = #tpu.dot_dimension_numbers<[1], [0], [0], [1], [0, 0, 1, 1], [], []>} : vector<8x4xbf16>, vector<4x512xbf16>, vector<8x512xf32> -> vector<8x512xf32>
    %14 = arith.addf %9, %13 : vector<8x512xf32>
    %c0_10 = arith.constant 0 : index
    %c2 = arith.constant 2 : index
    %15 = vector.load %arg6[%c0_10, %c2] : memref<4x640xbf16, #tpu.memory_space<vmem>>, vector<4x512xbf16>
    %c2_11 = arith.constant 2 : index
    %c0_12 = arith.constant 0 : index
    %c0_13 = arith.constant 0 : index
    %16 = vector.load %arg2[%c2_11, %c0_12, %c0_13] : memref<9x8x4xbf16, #tpu.memory_space<vmem>>, vector<1x8x4xbf16>
    %17 = vector.shape_cast %16 : vector<1x8x4xbf16> to vector<8x4xbf16>
    %cst_14 = arith.constant dense<0.000000e+00> : vector<8x512xf32>
    %18 = tpu.matmul %17, %15, %cst_14 {dimension_numbers = #tpu.dot_dimension_numbers<[1], [0], [0], [1], [0, 0, 1, 1], [], []>} : vector<8x4xbf16>, vector<4x512xbf16>, vector<8x512xf32> -> vector<8x512xf32>
    %19 = arith.addf %14, %18 : vector<8x512xf32>
    %c0_15 = arith.constant 0 : index
    %c34 = arith.constant 34 : index
    %20 = vector.load %arg6[%c0_15, %c34] : memref<4x640xbf16, #tpu.memory_space<vmem>>, vector<4x512xbf16>
    %c3 = arith.constant 3 : index
    %c0_16 = arith.constant 0 : index
    %c0_17 = arith.constant 0 : index
    %21 = vector.load %arg2[%c3, %c0_16, %c0_17] : memref<9x8x4xbf16, #tpu.memory_space<vmem>>, vector<1x8x4xbf16>
    %22 = vector.shape_cast %21 : vector<1x8x4xbf16> to vector<8x4xbf16>
    %cst_18 = arith.constant dense<0.000000e+00> : vector<8x512xf32>
    %23 = tpu.matmul %22, %20, %cst_18 {dimension_numbers = #tpu.dot_dimension_numbers<[1], [0], [0], [1], [0, 0, 1, 1], [], []>} : vector<8x4xbf16>, vector<4x512xbf16>, vector<8x512xf32> -> vector<8x512xf32>
    %24 = arith.addf %19, %23 : vector<8x512xf32>
    %c0_19 = arith.constant 0 : index
    %c35 = arith.constant 35 : index
    %25 = vector.load %arg6[%c0_19, %c35] : memref<4x640xbf16, #tpu.memory_space<vmem>>, vector<4x512xbf16>
    %c4 = arith.constant 4 : index
    %c0_20 = arith.constant 0 : index
    %c0_21 = arith.constant 0 : index
    %26 = vector.load %arg2[%c4, %c0_20, %c0_21] : memref<9x8x4xbf16, #tpu.memory_space<vmem>>, vector<1x8x4xbf16>
    %27 = vector.shape_cast %26 : vector<1x8x4xbf16> to vector<8x4xbf16>
    %cst_22 = arith.constant dense<0.000000e+00> : vector<8x512xf32>
    %28 = tpu.matmul %27, %25, %cst_22 {dimension_numbers = #tpu.dot_dimension_numbers<[1], [0], [0], [1], [0, 0, 1, 1], [], []>} : vector<8x4xbf16>, vector<4x512xbf16>, vector<8x512xf32> -> vector<8x512xf32>
    %29 = arith.addf %24, %28 : vector<8x512xf32>
    %c0_23 = arith.constant 0 : index
    %c36 = arith.constant 36 : index
    %30 = vector.load %arg6[%c0_23, %c36] : memref<4x640xbf16, #tpu.memory_space<vmem>>, vector<4x512xbf16>
    %c5 = arith.constant 5 : index
    %c0_24 = arith.constant 0 : index
    %c0_25 = arith.constant 0 : index
    %31 = vector.load %arg2[%c5, %c0_24, %c0_25] : memref<9x8x4xbf16, #tpu.memory_space<vmem>>, vector<1x8x4xbf16>
    %32 = vector.shape_cast %31 : vector<1x8x4xbf16> to vector<8x4xbf16>
    %cst_26 = arith.constant dense<0.000000e+00> : vector<8x512xf32>
    %33 = tpu.matmul %32, %30, %cst_26 {dimension_numbers = #tpu.dot_dimension_numbers<[1], [0], [0], [1], [0, 0, 1, 1], [], []>} : vector<8x4xbf16>, vector<4x512xbf16>, vector<8x512xf32> -> vector<8x512xf32>
    %34 = arith.addf %29, %33 : vector<8x512xf32>
    %c0_27 = arith.constant 0 : index
    %c68 = arith.constant 68 : index
    %35 = vector.load %arg6[%c0_27, %c68] : memref<4x640xbf16, #tpu.memory_space<vmem>>, vector<4x512xbf16>
    %c6 = arith.constant 6 : index
    %c0_28 = arith.constant 0 : index
    %c0_29 = arith.constant 0 : index
    %36 = vector.load %arg2[%c6, %c0_28, %c0_29] : memref<9x8x4xbf16, #tpu.memory_space<vmem>>, vector<1x8x4xbf16>
    %37 = vector.shape_cast %36 : vector<1x8x4xbf16> to vector<8x4xbf16>
    %cst_30 = arith.constant dense<0.000000e+00> : vector<8x512xf32>
    %38 = tpu.matmul %37, %35, %cst_30 {dimension_numbers = #tpu.dot_dimension_numbers<[1], [0], [0], [1], [0, 0, 1, 1], [], []>} : vector<8x4xbf16>, vector<4x512xbf16>, vector<8x512xf32> -> vector<8x512xf32>
    %39 = arith.addf %34, %38 : vector<8x512xf32>
    %c0_31 = arith.constant 0 : index
    %c69 = arith.constant 69 : index
    %40 = vector.load %arg6[%c0_31, %c69] : memref<4x640xbf16, #tpu.memory_space<vmem>>, vector<4x512xbf16>
    %c7 = arith.constant 7 : index
    %c0_32 = arith.constant 0 : index
    %c0_33 = arith.constant 0 : index
    %41 = vector.load %arg2[%c7, %c0_32, %c0_33] : memref<9x8x4xbf16, #tpu.memory_space<vmem>>, vector<1x8x4xbf16>
    %42 = vector.shape_cast %41 : vector<1x8x4xbf16> to vector<8x4xbf16>
    %cst_34 = arith.constant dense<0.000000e+00> : vector<8x512xf32>
    %43 = tpu.matmul %42, %40, %cst_34 {dimension_numbers = #tpu.dot_dimension_numbers<[1], [0], [0], [1], [0, 0, 1, 1], [], []>} : vector<8x4xbf16>, vector<4x512xbf16>, vector<8x512xf32> -> vector<8x512xf32>
    %44 = arith.addf %39, %43 : vector<8x512xf32>
    %c0_35 = arith.constant 0 : index
    %c70 = arith.constant 70 : index
    %45 = vector.load %arg6[%c0_35, %c70] : memref<4x640xbf16, #tpu.memory_space<vmem>>, vector<4x512xbf16>
    %c8 = arith.constant 8 : index
    %c0_36 = arith.constant 0 : index
    %c0_37 = arith.constant 0 : index
    %46 = vector.load %arg2[%c8, %c0_36, %c0_37] : memref<9x8x4xbf16, #tpu.memory_space<vmem>>, vector<1x8x4xbf16>
    %47 = vector.shape_cast %46 : vector<1x8x4xbf16> to vector<8x4xbf16>
    %cst_38 = arith.constant dense<0.000000e+00> : vector<8x512xf32>
    %48 = tpu.matmul %47, %45, %cst_38 {dimension_numbers = #tpu.dot_dimension_numbers<[1], [0], [0], [1], [0, 0, 1, 1], [], []>} : vector<8x4xbf16>, vector<4x512xbf16>, vector<8x512xf32> -> vector<8x512xf32>
    %49 = arith.addf %44, %48 : vector<8x512xf32>
    %c0_39 = arith.constant 0 : index
    %c0_40 = arith.constant 0 : index
    %50 = vector.load %arg3[%c0_39, %c0_40] : memref<8x1xf32, #tpu.memory_space<vmem>>, vector<8x1xf32>
    %51 = vector.broadcast %50 : vector<8x1xf32> to vector<8x512xf32>
    %52 = arith.addf %49, %51 : vector<8x512xf32>
    %c0_41 = arith.constant 0 : index
    %c0_42 = arith.constant 0 : index
    %c0_43 = arith.constant 0 : index
    %53 = vector.load %arg5[%c0_41, %c0_42, %c0_43] : memref<1x8x512xf32, #tpu.memory_space<vmem>>, vector<1x8x512xf32>
    %54 = vector.shape_cast %53 : vector<1x8x512xf32> to vector<8x512xf32>
    %55 = vector.shape_cast %52 : vector<8x512xf32> to vector<1x8x512xf32>
    tpu.vector_store %arg5[%c0_41, %c0_42, %c0_43], %55 {strides = array<i32>} : memref<1x8x512xf32, #tpu.memory_space<vmem>>, vector<1x8x512xf32>,
    return
  }
  func.func @transform_0(%arg0: i32, %arg1: i32) -> (i32, i32, i32) {
    %c0_i32 = arith.constant 0 : i32
    %c0_i32_0 = arith.constant 0 : i32
    %c0_i32_1 = arith.constant 0 : i32
    %c0_i32_2 = arith.constant 0 : i32
    return %c0_i32, %c0_i32_0, %c0_i32_1 : i32, i32, i32
  }
  func.func @transform_1(%arg0: i32, %arg1: i32) -> (i32, i32) {
    %c0_i32 = arith.constant 0 : i32
    %c0_i32_0 = arith.constant 0 : i32
    %c0_i32_1 = arith.constant 0 : i32
    return %c0_i32, %c0_i32_0 : i32, i32
  }
  func.func @transform_3(%arg0: i32, %arg1: i32) -> (i32, i32, i32) {
    %c0_i32 = arith.constant 0 : i32
    %c0_i32_0 = arith.constant 0 : i32
    return %arg0, %c0_i32, %arg1 : i32, i32, i32
  }
}

</mosaic_0001>

<bundles_post_ra>
// kernel: conv_upsample_forward.1
= control target key start
LH: loop header
LB: loop body
LE: loop exit
PB: predicated region body
PF: predicated region fallthrough
CT: control target
= control target key end

     0   :  { %s1382_s12 = smov 0   ;;  %s1384_s13 = smov 0   ;;  %s1580_s0 = inlined_call_operand.vmem [shape: bf16[9,8,4], index: 0, kind: input, shape index: {}]   ;;  %s1581_s1 = inlined_call_operand.vmem [shape: f32[8,1], index: 1, kind: input, shape index: {}]   ;;  %s1582_s2 = inlined_call_operand.vmem [shape: bf16[2,4,1664], index: 2, kind: input, shape index: {}]   ;;  %s1583_s3 = inlined_call_operand.vmem [shape: f32[2,8,1536], index: 3, kind: output, shape index: {}]  }
   0x1   :  { %s1386_s14 = smov 0   ;;  %s1388_s15 = smov 0  }
   0x2   :  { %s1390_s16 = smov 0  }
   0x3 LB: > { %s22_s17 = sadd.s32 1, %s1343_s14  ;;  %s25_s18 = sadd.s32 1, %s1347_s15  ;;  %s1351_s16 = sphi %s1390_s16, %s13_s16   ;;  %s1347_s15 = sphi %s1388_s15, %s1587_s15   ;;  %s1343_s14 = sphi %s1386_s14, %s1586_s14   ;;  %s1339_s13 = sphi %s1384_s13, %s1585_s13   ;;  %s1335_s12 = sphi %s1382_s12, %s1584_s12  }
   0x4   : > { %p23_p0 = scmp.ge.s32.totalorder %s22_s17, 3  ;;  %p1206_p1 = scmp.ge.s32.totalorder %s1351_s16, 1 }
   0x5   : > { %p117_p2 = scmp.lt.s32.totalorder %s1351_s16, 7 }
   0x6   : > { %s1589_s17 = smov (%p23_p0, %s22_s17), 0  ;;  %s1591_s18 = smov (!%p23_p0, %s25_s18), %s1347_s15 }
   0x7   : > { %p118_p3 = pnand %p1206_p1, %p117_p2  ;;  %p27_p4 = scmp.ge.s32.totalorder %s1591_s18, 2 }
   0x8   : > { %s1207_s19 = sshll.u32 (!%p118_p3), %s1335_s12, 2  ;;  %p139_p5 = scmp.lt.s32.totalorder (!%p118_p3), %s1339_s13, 1 }
   0x9   : > { %s1593_s18 = smov (%p27_p4, %s1591_s18), 0  ;;  %121 = sbr.rel (%p118_p3) target bundleno = 431 (0x1af), region = 28 }
   0xa   : > { %p141_p6 = scmp.lt.s32.totalorder (!%p118_p3), %s1207_s19, 11  ;;  %s1209_s20 = sshll.u32 (!%p118_p3), %s1335_s12, 9 }
   0xb   : > { %s150_s23 = sshra.s32 (!%p118_p3), %s1209_s20, 7  ;;  %s152_s24 = smul.u32 (!%p118_p3), 13, %s1339_s13 }
   0xd   : > { %s153_s27 = sadd.s32 (!%p118_p3), %s152_s24, %s150_s23 }
   0xe   : > { %s140_s21 = scalar_select %p139_p5, %s1339_s13, 1 }
   0xf   : > { %s1595_s19 = smov (!%p141_p6, %s1207_s19), 11  ;;  %s1210_s4 = sshll.u32 %s153_s27, 1 }
  0x10   : > { %s1259_s22 = smul.u32 12, %s140_s21  ;;  %s155_s7 = scalar_lea.vmem %s1582_s2, %s1210_s4 }
  0x11   : > { %v168_v0 = vld [vmem:[%s155_s7] sm:$0xff]  ;;  %v1211_v1 = vld [vmem:[%s155_s7 + $0x8] sm:$0x3] }
  0x12   : > { %s144_s25 = sadd.s32 %s1259_s22, %s1595_s19  ;;  %169 = vst [vmem:[#allocation2] sm:$0xff] %v168_v0 }
  0x13   : > { %s1208_s26 = sshll.u32 %s144_s25, 3  ;;  %181 = vst [vmem:[#allocation2 + $0x8] sm:$0x3] %v1211_v1 }
  0x14   : > { %s1415_s30 = scalar_lea.vmem %s1583_s3, %s1208_s26 }
  0x15   : > { %185 = vsyncadd [#allocation3], 160 }
  0x16   : > { %1331 = dma.done.wait [#allocation3], 160 }
  0x17   : > { %1332 = vsyncadd [#allocation3], 4294967136  ;;  %s1353_s8 = smov 127   ;;  %s1354_s9 = smov 126   ;;  %vm221_vm0 = vcmask 1039360   ;;  %vm230_vm1 = vcmask 1041408  }
  0x18   : > { %s1355_s10 = smov 94   ;;  %s1356_s11 = smov 93   ;;  %v1212_v61 = vld [vmem:[%s1580_s0 + $0x4] sm:$0xf]  ;;  %vm226_vm2 = vcmask 31744   ;;  %vm393_vm3 = vcmask 1031168  }
  0x19   : > { %v1420_v3 = vld [vmem:[#allocation2] sm:$0xff]  ;;  %s1357_s12 = smov 92   ;;  %s1358_s13 = smov 60   ;;  %vm498_vm4 = vcmask 769024   ;;  %vm603_vm5 = vcmask 760832   ;;  %vm708_vm6 = vcmask 752640  }
  0x1a   : > { %v193_v2 = vld [vmem:[#allocation2 + $0x8] sm:$0x3]  ;;  %197 = vst [vmem:[#allocation1] ss:$4 sm:$0xff] %v1420_v3  ;;  %s1359_s19 = smov 59   ;;  %s1360_s20 = smov 58  }
  0x1b   : > { %200 = vst [vmem:[#allocation1 + $0x20] ss:$4 sm:$0xff] %v193_v2  ;;  %v365_v5 = vld [vmem:[#allocation2 + $0x8] sm:$0x3]  ;;  %vm813_vm7 = vcmask 490496   ;;  %vm918_vm8 = vcmask 482304  }
  0x1c   : > { %v470_v10 = vld [vmem:[#allocation2 + $0x8] sm:$0x3]  ;;  %vm1023_vm9 = vcmask 474112  }
  0x1d   : > { %v575_v16 = vld [vmem:[#allocation2 + $0x8] sm:$0x3] }
  0x1e   : > { %v680_v22 = vld [vmem:[#allocation2 + $0x8] sm:$0x3] }
  0x1f   : > { %v785_v28 = vld [vmem:[#allocation2 + $0x8] sm:$0x3] }
  0x20   : > { %v890_v34 = vld [vmem:[#allocation2 + $0x8] sm:$0x3] }
  0x21   : > { %v205_v6 = vld.sshfl [vmem:[#allocation1 + $0x10] sm:$0xff pattern:$0x73625140]  ;;  %v207_v7 = vld.sshfl [vmem:[#allocation1 + $0x18] sm:$0xff pattern:$0x73625140] }
  0x22   : > { %v209_v4 = vld.sshfl [vmem:[#allocation1 + $0x20] sm:$0xff pattern:$0x73625140]  ;;  %215 = vrot.lane.b32.xlu0 %v205_v6, %s1353_s8  ;;  %v203_v9 = vld.sshfl [vmem:[#allocation1 + $0x8] sm:$0xff pattern:$0x73625140] }
  0x23   : > { %219 = vrot.lane.b32.xlu1 %v209_v4, %s1353_s8  ;;  %v201_v8 = vld.sshfl [vmem:[#allocation1] sm:$0xff pattern:$0x73625140]  ;;  %213 = vrot.lane.b32.xlu2 %v203_v9, %s1353_s8  ;;  %372 = vst [vmem:[#allocation1 + $0x20] ss:$4 sm:$0xff] %v365_v5 }
  0x24   : > { %296 = vst [vmem:[#allocation1] ss:$4 sm:$0xff] %v1420_v3  ;;  %v995_v40 = vld [vmem:[#allocation2 + $0x8] sm:$0x3] }
  0x2a   : > { %217 = vrot.lane.b32.xlu0 %v207_v7, %s1353_s8  ;;  %v381_v15 = vld.sshfl [vmem:[#allocation1 + $0x20] sm:$0xff pattern:$0x73625140] }
  0x2b   : > { %211 = vrot.lane.b32.xlu1 %v201_v8, %s1353_s8  ;;  %v1424_v11 = vld.sshfl [vmem:[#allocation1] sm:$0xff pattern:$0x73625140]  ;;  %v1426_v12 = vld.sshfl [vmem:[#allocation1 + $0x8] sm:$0xff pattern:$0x73625140] }
  0x2c   : > { %v1428_v13 = vld.sshfl [vmem:[#allocation1 + $0x10] sm:$0xff pattern:$0x73625140]  ;;  %v1430_v14 = vld.sshfl [vmem:[#allocation1 + $0x18] sm:$0xff pattern:$0x73625140] }
  0x2d   : > { %369 = vst [vmem:[#allocation1] ss:$4 sm:$0xff] %v1420_v3  ;;  %v306_v59 = vsel %vm230_vm1, %v1426_v12, 0  ;;  %v310_v7 = vsel %vm230_vm1, %v1430_v14, 0  ;;  %v304_v12 = vsel %vm230_vm1, %v1424_v11, 0 }
  0x2e   : > { %477 = vst [vmem:[#allocation1 + $0x20] ss:$4 sm:$0xff] %v470_v10 }
  0x33   : > { %391 = vrot.lane.b32.xlu1 %v381_v15, %s1354_s9 }
  0x34   : > { %v379_v17 = vld.sshfl [vmem:[#allocation1 + $0x18] sm:$0xff pattern:$0x73625140]  ;;  %v373_v18 = vld.sshfl [vmem:[#allocation1] sm:$0xff pattern:$0x73625140] }
  0x35   : > { %389 = vrot.lane.b32.xlu0 %v379_v17, %s1354_s9  ;;  %v377_v19 = vld.sshfl [vmem:[#allocation1 + $0x10] sm:$0xff pattern:$0x73625140]  ;;  %v375_v20 = vld.sshfl [vmem:[#allocation1 + $0x8] sm:$0xff pattern:$0x73625140] }
  0x36   : > { %474 = vst [vmem:[#allocation1] ss:$4 sm:$0xff] %v1420_v3  ;;  %387 = vrot.lane.b32.xlu2 %v377_v19, %s1354_s9  ;;  %v486_v21 = vld.sshfl [vmem:[#allocation1 + $0x20] sm:$0xff pattern:$0x73625140] }
  0x37   : > { %582 = vst [vmem:[#allocation1 + $0x20] ss:$4 sm:$0xff] %v575_v16  ;;  %v191_v16 = vld [vmem:[%s1580_s0] sm:$0xf] }
  0x3d   : > { %385 = vrot.lane.b32.xlu0 %v375_v20, %s1354_s9  ;;  %v480_v23 = vld.sshfl [vmem:[#allocation1 + $0x8] sm:$0xff pattern:$0x73625140]  ;;  %v484_v24 = vld.sshfl [vmem:[#allocation1 + $0x18] sm:$0xff pattern:$0x73625140] }
  0x3e   : > { %v482_v25 = vld.sshfl [vmem:[#allocation1 + $0x10] sm:$0xff pattern:$0x73625140]  ;;  %v591_v26 = vld.sshfl [vmem:[#allocation1 + $0x20] sm:$0xff pattern:$0x73625140]  ;;  %383 = vrot.lane.b32.xlu2 %v373_v18, %s1354_s9 }
  0x3f   : > { %492 = vrot.lane.b32.xlu1 %v482_v25, %s1355_s10  ;;  %687 = vst [vmem:[#allocation1 + $0x20] ss:$4 sm:$0xff] %v680_v22  ;;  %v478_v27 = vld.sshfl [vmem:[#allocation1] sm:$0xff pattern:$0x73625140] }
  0x40   : > { %579 = vst [vmem:[#allocation1] ss:$4 sm:$0xff] %v1420_v3 }
  0x45   : > { %496 = vrot.lane.b32.xlu0 %v486_v21, %s1355_s10 }
  0x46   : > { %494 = vrot.lane.b32.xlu2 %v484_v24, %s1355_s10  ;;  %v696_v33 = vld.sshfl [vmem:[#allocation1 + $0x20] sm:$0xff pattern:$0x73625140] }
  0x47   : > { %488 = vrot.lane.b32.xlu1 %v478_v27, %s1355_s10  ;;  %v589_v29 = vld.sshfl [vmem:[#allocation1 + $0x18] sm:$0xff pattern:$0x73625140]  ;;  %v587_v30 = vld.sshfl [vmem:[#allocation1 + $0x10] sm:$0xff pattern:$0x73625140] }
  0x48   : > { %v585_v31 = vld.sshfl [vmem:[#allocation1 + $0x8] sm:$0xff pattern:$0x73625140]  ;;  %v583_v32 = vld.sshfl [vmem:[#allocation1] sm:$0xff pattern:$0x73625140] }
  0x49   : > { %684 = vst [vmem:[#allocation1] ss:$4 sm:$0xff] %v1420_v3 }
  0x4a   : > { %792 = vst [vmem:[#allocation1 + $0x20] ss:$4 sm:$0xff] %v785_v28 }
  0x4d   : > { %597 = vrot.lane.b32.xlu0 %v587_v30, %s1356_s11 }
  0x4e   : > { %490 = vrot.lane.b32.xlu2 %v480_v23, %s1355_s10 }
  0x4f   : > { %599 = vrot.lane.b32.xlu1 %v589_v29, %s1356_s11 }
  0x50   : > { %v688_v35 = vld.sshfl [vmem:[#allocation1] sm:$0xff pattern:$0x73625140]  ;;  %v692_v36 = vld.sshfl [vmem:[#allocation1 + $0x10] sm:$0xff pattern:$0x73625140] }
  0x51   : > { %v694_v37 = vld.sshfl [vmem:[#allocation1 + $0x18] sm:$0xff pattern:$0x73625140]  ;;  %v690_v38 = vld.sshfl [vmem:[#allocation1 + $0x8] sm:$0xff pattern:$0x73625140] }
  0x52   : > { %789 = vst [vmem:[#allocation1] ss:$4 sm:$0xff] %v1420_v3  ;;  %v801_v39 = vld.sshfl [vmem:[#allocation1 + $0x20] sm:$0xff pattern:$0x73625140] }
  0x53   : > { %897 = vst [vmem:[#allocation1 + $0x20] ss:$4 sm:$0xff] %v890_v34 }
  0x55   : > { %593 = vrot.lane.b32.xlu0 %v583_v32, %s1356_s11  ;;  %v1221_v32 = vld [vmem:[%s1580_s0 + $0x8] sm:$0xf] }
  0x56   : > { %601 = vrot.lane.b32.xlu2 %v591_v26, %s1356_s11 }
  0x57   : > { %595 = vrot.lane.b32.xlu1 %v585_v31, %s1356_s11 }
  0x59   : > { %v797_v41 = vld.sshfl [vmem:[#allocation1 + $0x10] sm:$0xff pattern:$0x73625140]  ;;  %v793_v42 = vld.sshfl [vmem:[#allocation1] sm:$0xff pattern:$0x73625140] }
  0x5a   : > { %v906_v43 = vld.sshfl [vmem:[#allocation1 + $0x20] sm:$0xff pattern:$0x73625140]  ;;  %v795_v44 = vld.sshfl [vmem:[#allocation1 + $0x8] sm:$0xff pattern:$0x73625140] }
  0x5b   : > { %1002 = vst [vmem:[#allocation1 + $0x20] ss:$4 sm:$0xff] %v995_v40  ;;  %v799_v45 = vld.sshfl [vmem:[#allocation1 + $0x18] sm:$0xff pattern:$0x73625140] }
  0x5c   : > { %894 = vst [vmem:[#allocation1] ss:$4 sm:$0xff] %v1420_v3 }
  0x5d   : > { %704 = vrot.lane.b32.xlu0 %v694_v37, %s1357_s12 }
  0x5e   : > { %702 = vrot.lane.b32.xlu2 %v692_v36, %s1357_s12 }
  0x5f   : > { %706 = vrot.lane.b32.xlu1 %v696_v33, %s1357_s12 }
  0x62   : > { %v1011_v51 = vld.sshfl [vmem:[#allocation1 + $0x20] sm:$0xff pattern:$0x73625140] }
  0x63   : > { %v904_v46 = vld.sshfl [vmem:[#allocation1 + $0x18] sm:$0xff pattern:$0x73625140]  ;;  %v902_v47 = vld.sshfl [vmem:[#allocation1 + $0x10] sm:$0xff pattern:$0x73625140] }
  0x64   : > { %v900_v48 = vld.sshfl [vmem:[#allocation1 + $0x8] sm:$0xff pattern:$0x73625140]  ;;  %v898_v49 = vld.sshfl [vmem:[#allocation1] sm:$0xff pattern:$0x73625140] }
  0x65   : > { %700 = vrot.lane.b32.xlu0 %v690_v38, %s1357_s12  ;;  %999 = vst [vmem:[#allocation1] ss:$4 sm:$0xff] %v1420_v3  ;;  %v308_v3 = vsel %vm230_vm1, %v1428_v13, 0 }
  0x66   : > { %698 = vrot.lane.b32.xlu2 %v688_v35, %s1357_s12 }
  0x67   : > { %807 = vrot.lane.b32.xlu1 %v797_v41, %s1358_s13 }
  0x6c   : > { %v1009_v50 = vld.sshfl [vmem:[#allocation1 + $0x18] sm:$0xff pattern:$0x73625140]  ;;  %v1005_v53 = vld.sshfl [vmem:[#allocation1 + $0x8] sm:$0xff pattern:$0x73625140] }
  0x6d   : > { %811 = vrot.lane.b32.xlu0 %v801_v39, %s1358_s13  ;;  %v1007_v55 = vld.sshfl [vmem:[#allocation1 + $0x10] sm:$0xff pattern:$0x73625140]  ;;  %v1003_v63 = vld.sshfl [vmem:[#allocation1] sm:$0xff pattern:$0x73625140] }
  0x6e   : > { %809 = vrot.lane.b32.xlu2 %v799_v45, %s1358_s13 }
  0x6f   : > { %803 = vrot.lane.b32.xlu1 %v793_v42, %s1358_s13 }
  0x75   : > { %912 = vrot.lane.b32.xlu0 %v902_v47, %s1359_s19  ;;  %v1226_v47 = vld [vmem:[%s1580_s0 + $0xc] sm:$0xf] }
  0x76   : > { %805 = vrot.lane.b32.xlu2 %v795_v44, %s1358_s13 }
  0x77   : > { %914 = vrot.lane.b32.xlu1 %v904_v46, %s1359_s19 }
  0x7d   : > { %908 = vrot.lane.b32.xlu0 %v898_v49, %s1359_s19  ;;  %v214_v52 = vpop.permute.xlu2 %213 }
  0x7e   : > { %916 = vrot.lane.b32.xlu2 %v906_v43, %s1359_s19 }
  0x7f   : > { %910 = vrot.lane.b32.xlu1 %v900_v48, %s1359_s19 }
  0x85   : > { %1019 = vrot.lane.b32.xlu0 %v1009_v50, %s1360_s20 }
  0x86   : > { %1017 = vrot.lane.b32.xlu2 %v1007_v55, %s1360_s20 }
  0x87   : > { %1021 = vrot.lane.b32.xlu1 %v1011_v51, %s1360_s20 }
  0x8d   : > { %1015 = vrot.lane.b32.xlu0 %v1005_v53, %s1360_s20 }
  0x8e   : > { %1013 = vrot.lane.b32.xlu2 %v1003_v63, %s1360_s20 }
  0x90   : > { %v388_v54 = vpop.permute.xlu2 %387 }
  0x94   : > { %v216_v57 = vpop.permute.xlu0 %215 }
  0x95   : > { %v220_v56 = vpop.permute.xlu1 %219  ;;  %v223_v58 = vsel %vm221_vm0, %v214_v52, %v216_v57 }
  0x96   : > { %v235_v60 = vsel %vm230_vm1, %v223_v58, 0 }
  0x97   : > { %263 = vmatpush.bf16.msra.mxu1 %v235_v60 }
  0x98   : > { %v384_v62 = vpop.permute.xlu2 %383 }
  0x9a   : > { %1214 = vmatmul.msk.bf16.vlgmr.msra.gmra.mxu1 %vm226_vm2, %v1212_v61 }
  0x9b   : > { %332 = vmatpush.bf16.msrb.mxu1 %v306_v59 }
  0x9c   : > { %v218_v1 = vpop.permute.xlu0 %217 }
  0x9d   : > { %v212_v0 = vpop.permute.xlu1 %211  ;;  %v224_v5 = vsel %vm221_vm0, %v216_v57, %v218_v1  ;;  %v225_v6 = vsel %vm221_vm0, %v218_v1, %v220_v56 }
  0x9e   : > { %v222_v2 = vsel %vm221_vm0, %v212_v0, %v214_v52  ;;  %v238_v8 = vsel %vm230_vm1, %v224_v5, 0  ;;  %v241_v9 = vsel %vm230_vm1, %v225_v6, 0 }
  0x9f   : > { %v232_v4 = vsel %vm230_vm1, %v222_v2, 0  ;;  %276 = vmatpush.bf16.msra.mxu2 %v238_v8  ;;  %289 = vmatpush.bf16.msra.mxu3 %v241_v9 }
  0xa0   : > { %250 = vmatpush.bf16.msra.mxu0 %v232_v4  ;;  %v495_v10 = vpop.permute.xlu2 %494 }
  0xa2   : > { %1215 = vmatmul.msk.bf16.vlgmr.msra.gmra.mxu2 %vm226_vm2, %v1212_v61  ;;  %1216 = vmatmul.msk.bf16.vlgmr.msra.gmra.mxu3 %vm226_vm2, %v1212_v61 }
  0xa3   : > { %345 = vmatpush.bf16.msrb.mxu2 %v308_v3  ;;  %358 = vmatpush.bf16.msrb.mxu3 %v310_v7 }
  0xa4   : > { %1213 = vmatmul.msk.bf16.vlgmr.msra.gmra.mxu0 %vm226_vm2, %v1212_v61 }
  0xa5   : > { %319 = vmatpush.bf16.msrb.mxu0 %v304_v12  ;;  %v392_v14 = vpop.permute.xlu1 %391 }
  0xa7   : > { %v390_v13 = vpop.permute.xlu0 %389 }
  0xa8   : > { %v396_v15 = vsel %vm393_vm3, %v388_v54, %v390_v13  ;;  %v397_v17 = vsel %vm393_vm3, %v390_v13, %v392_v14  ;;  %v491_v18 = vpop.permute.xlu2 %490 }
  0xa9   : > { %v408_v19 = vsel %vm230_vm1, %v396_v15, 0  ;;  %v411_v11 = vsel %vm230_vm1, %v397_v17, 0 }
  0xaa   : > { %446 = vmatpush.bf16.msra.mxu2 %v408_v19  ;;  %459 = vmatpush.bf16.msra.mxu3 %v411_v11 }
  0xab   : > { %1218 = vmatmul.msk.bf16.vlgmr.msrb.gmra.mxu1 %vm226_vm2, %v191_v16 }
  0xaf   : > { %v386_v20 = vpop.permute.xlu0 %385 }
  0xb0   : > { %v395_v21 = vsel %vm393_vm3, %v386_v20, %v388_v54  ;;  %v394_v22 = vsel %vm393_vm3, %v384_v62, %v386_v20  ;;  %v602_v23 = vpop.permute.xlu2 %601  ;;  %v1231_v62 = vld [vmem:[%s1580_s0 + $0x10] sm:$0xf] }
  0xb1   : > { %v405_v24 = vsel %vm230_vm1, %v395_v21, 0  ;;  %v402_v25 = vsel %vm230_vm1, %v394_v22, 0  ;;  %v493_v26 = vpop.permute.xlu1 %492 }
  0xb2   : > { %433 = vmatpush.bf16.msra.mxu1 %v405_v24  ;;  %v501_v27 = vsel %vm498_vm4, %v493_v26, %v495_v10  ;;  %v500_v28 = vsel %vm498_vm4, %v491_v18, %v493_v26  ;;  %1219 = vmatmul.msk.bf16.vlgmr.msrb.gmra.mxu2 %vm226_vm2, %v191_v16 }
  0xb3   : > { %1220 = vmatmul.msk.bf16.vlgmr.msrb.gmra.mxu3 %vm226_vm2, %v191_v16  ;;  %v513_v29 = vsel %vm230_vm1, %v501_v27, 0  ;;  %v510_v30 = vsel %vm230_vm1, %v500_v28, 0  ;;  %420 = vmatpush.bf16.msra.mxu0 %v402_v25 }
  0xb4   : > { %1217 = vmatmul.msk.bf16.vlgmr.msrb.gmra.mxu0 %vm226_vm2, %v191_v16  ;;  %551 = vmatpush.bf16.msrb.mxu2 %v513_v29  ;;  %v1236_v16 = vld [vmem:[%s1580_s0 + $0x14] sm:$0xf] }
  0xb6   : > { %538 = vmatpush.bf16.msrb.mxu1 %v510_v30  ;;  %v1241_v30 = vld [vmem:[%s1580_s0 + $0x18] sm:$0xf] }
  0xb7   : > { %v497_v31 = vpop.permute.xlu0 %496 }
  0xb8   : > { %v502_v33 = vsel %vm498_vm4, %v495_v10, %v497_v31  ;;  %v703_v36 = vpop.permute.xlu2 %702 }
  0xb9   : > { %v516_v34 = vsel %vm230_vm1, %v502_v33, 0  ;;  %v489_v35 = vpop.permute.xlu1 %488 }
  0xba   : > { %v499_v37 = vsel %vm498_vm4, %v489_v35, %v491_v18  ;;  %564 = vmatpush.bf16.msrb.mxu3 %v516_v34 }
  0xbb   : > { %1223 = vmatmul.msk.bf16.vlgmr.msra.gmra.mxu1 %vm226_vm2, %v1221_v32  ;;  %v507_v38 = vsel %vm230_vm1, %v499_v37, 0 }
  0xbc   : > { %525 = vmatpush.bf16.msrb.mxu0 %v507_v38 }
  0xbf   : > { %v598_v39 = vpop.permute.xlu0 %597 }
  0xc0   : > { %v699_v45 = vpop.permute.xlu2 %698 }
  0xc1   : > { %v600_v40 = vpop.permute.xlu1 %599 }
  0xc2   : > { %v606_v41 = vsel %vm603_vm5, %v598_v39, %v600_v40  ;;  %v607_v42 = vsel %vm603_vm5, %v600_v40, %v602_v23  ;;  %1224 = vmatmul.msk.bf16.vlgmr.msra.gmra.mxu2 %vm226_vm2, %v1221_v32 }
  0xc3   : > { %1225 = vmatmul.msk.bf16.vlgmr.msra.gmra.mxu3 %vm226_vm2, %v1221_v32  ;;  %v618_v43 = vsel %vm230_vm1, %v606_v41, 0  ;;  %v621_v44 = vsel %vm230_vm1, %v607_v42, 0  ;;  %v1361_v42 = vmov 0  }
  0xc4   : > { %1222 = vmatmul.msk.bf16.vlgmr.msra.gmra.mxu0 %vm226_vm2, %v1221_v32  ;;  %656 = vmatpush.bf16.msra.mxu2 %v618_v43  ;;  %v1099_v43 = vld [vmem:[%s1581_s1] sm:$0xff] }
  0xc5   : > { %669 = vmatpush.bf16.msra.mxu3 %v621_v44  ;;  %1309 = vset.pattern.permute.xlu1 %v1361_v42  ;;  %v1246_v44 = vld [vmem:[%s1580_s0 + $0x1c] sm:$0xf] }
  0xc6   : > { %1310 = vset.pattern.permute.xlu0 %v1361_v42  ;;  %1102 = vperm.xlu1 %1309, %v1099_v43  }
  0xc7   : > { %v594_v46 = vpop.permute.xlu0 %593 }
  0xc8   : > { %v810_v53 = vpop.permute.xlu2 %809 }
  0xc9   : > { %v596_v48 = vpop.permute.xlu1 %595 }
  0xca   : > { %v605_v49 = vsel %vm603_vm5, %v596_v48, %v598_v39  ;;  %v604_v50 = vsel %vm603_vm5, %v594_v46, %v596_v48  ;;  %v1251_v46 = vld [vmem:[%s1580_s0 + $0x20] sm:$0xf] }
  0xcb   : > { %1228 = vmatmul.msk.bf16.vlgmr.msrb.gmra.mxu1 %vm226_vm2, %v1226_v47  ;;  %v615_v51 = vsel %vm230_vm1, %v605_v49, 0  ;;  %v612_v52 = vsel %vm230_vm1, %v604_v50, 0 }
  0xcc   : > { %643 = vmatpush.bf16.msra.mxu1 %v615_v51  ;;  %630 = vmatpush.bf16.msra.mxu0 %v612_v52 }
  0xcf   : > { %v705_v54 = vpop.permute.xlu0 %704 }
  0xd0   : > { %v711_v55 = vsel %vm708_vm6, %v703_v36, %v705_v54  ;;  %v806_v61 = vpop.permute.xlu2 %805 }
  0xd1   : > { %v723_v56 = vsel %vm230_vm1, %v711_v55, 0  ;;  %v707_v57 = vpop.permute.xlu1 %706 }
  0xd2   : > { %v712_v58 = vsel %vm708_vm6, %v705_v54, %v707_v57  ;;  %1229 = vmatmul.msk.bf16.vlgmr.msrb.gmra.mxu2 %vm226_vm2, %v1226_v47 }
  0xd3   : > { %1230 = vmatmul.msk.bf16.vlgmr.msrb.gmra.mxu3 %vm226_vm2, %v1226_v47  ;;  %v726_v59 = vsel %vm230_vm1, %v712_v58, 0  ;;  %761 = vmatpush.bf16.msrb.mxu2 %v723_v56 }
  0xd4   : > { %1227 = vmatmul.msk.bf16.vlgmr.msrb.gmra.mxu0 %vm226_vm2, %v1226_v47  ;;  %774 = vmatpush.bf16.msrb.mxu3 %v726_v59 }
  0xd7   : > { %v701_v60 = vpop.permute.xlu0 %700 }
  0xd8   : > { %v710_v63 = vsel %vm708_vm6, %v701_v60, %v703_v36  ;;  %v709_v0 = vsel %vm708_vm6, %v699_v45, %v701_v60  ;;  %v917_v18 = vpop.permute.xlu2 %916 }
  0xd9   : > { %v720_v1 = vsel %vm230_vm1, %v710_v63, 0  ;;  %v717_v2 = vsel %vm230_vm1, %v709_v0, 0  ;;  %v808_v3 = vpop.permute.xlu1 %807 }
  0xda   : > { %748 = vmatpush.bf16.msrb.mxu1 %v720_v1  ;;  %735 = vmatpush.bf16.msrb.mxu0 %v717_v2  ;;  %v815_v4 = vsel %vm813_vm7, %v806_v61, %v808_v3  ;;  %v816_v6 = vsel %vm813_vm7, %v808_v3, %v810_v53 }
  0xdb   : > { %1233 = vmatmul.msk.bf16.vlgmr.msra.gmra.mxu1 %vm226_vm2, %v1231_v62  ;;  %v825_v5 = vsel %vm230_vm1, %v815_v4, 0  ;;  %v828_v9 = vsel %vm230_vm1, %v816_v6, 0 }
  0xde   : > { %853 = vmatpush.bf16.msra.mxu1 %v825_v5 }
  0xdf   : > { %v812_v7 = vpop.permute.xlu0 %811 }
  0xe0   : > { %v817_v8 = vsel %vm813_vm7, %v810_v53, %v812_v7  ;;  %v1018_v28 = vpop.permute.xlu2 %1017 }
  0xe1   : > { %v831_v10 = vsel %vm230_vm1, %v817_v8, 0  ;;  %v804_v12 = vpop.permute.xlu1 %803 }
  0xe2   : > { %v814_v13 = vsel %vm813_vm7, %v804_v12, %v806_v61  ;;  %1234 = vmatmul.msk.bf16.vlgmr.msra.gmra.mxu2 %vm226_vm2, %v1231_v62 }
  0xe3   : > { %1235 = vmatmul.msk.bf16.vlgmr.msra.gmra.mxu3 %vm226_vm2, %v1231_v62  ;;  %v822_v14 = vsel %vm230_vm1, %v814_v13, 0  ;;  %866 = vmatpush.bf16.msra.mxu2 %v828_v9 }
  0xe4   : > { %1232 = vmatmul.msk.bf16.vlgmr.msra.gmra.mxu0 %vm226_vm2, %v1231_v62  ;;  %879 = vmatpush.bf16.msra.mxu3 %v831_v10 }
  0xe5   : > { %840 = vmatpush.bf16.msra.mxu0 %v822_v14 }
  0xe7   : > { %v913_v15 = vpop.permute.xlu0 %912 }
  0xe8   : > { %v1014_v32 = vpop.permute.xlu2 %1013 }
  0xe9   : > { %v915_v17 = vpop.permute.xlu1 %914 }
  0xea   : > { %v921_v19 = vsel %vm918_vm8, %v913_v15, %v915_v17  ;;  %v922_v11 = vsel %vm918_vm8, %v915_v17, %v917_v18 }
  0xeb   : > { %1238 = vmatmul.msk.bf16.vlgmr.msrb.gmra.mxu1 %vm226_vm2, %v1236_v16  ;;  %v933_v21 = vsel %vm230_vm1, %v921_v19, 0  ;;  %v936_v23 = vsel %vm230_vm1, %v922_v11, 0 }
  0xef   : > { %v909_v20 = vpop.permute.xlu0 %908 }
  0xf1   : > { %v911_v22 = vpop.permute.xlu1 %910 }
  0xf2   : > { %v920_v24 = vsel %vm918_vm8, %v911_v22, %v913_v15  ;;  %v919_v25 = vsel %vm918_vm8, %v909_v20, %v911_v22  ;;  %1239 = vmatmul.msk.bf16.vlgmr.msrb.gmra.mxu2 %vm226_vm2, %v1236_v16 }
  0xf3   : > { %1240 = vmatmul.msk.bf16.vlgmr.msrb.gmra.mxu3 %vm226_vm2, %v1236_v16  ;;  %v930_v26 = vsel %vm230_vm1, %v920_v24, 0  ;;  %v927_v27 = vsel %vm230_vm1, %v919_v25, 0  ;;  %971 = vmatpush.bf16.msrb.mxu2 %v933_v21 }
  0xf4   : > { %1237 = vmatmul.msk.bf16.vlgmr.msrb.gmra.mxu0 %vm226_vm2, %v1236_v16  ;;  %958 = vmatpush.bf16.msrb.mxu1 %v930_v26 }
  0xf5   : > { %984 = vmatpush.bf16.msrb.mxu3 %v936_v23  ;;  %945 = vmatpush.bf16.msrb.mxu0 %v927_v27 }
  0xf7   : > { %v1020_v29 = vpop.permute.xlu0 %1019 }
  0xf8   : > { %v1026_v34 = vsel %vm1023_vm9, %v1018_v28, %v1020_v29 }
  0xf9   : > { %v1022_v31 = vpop.permute.xlu1 %1021  ;;  %v1038_v39 = vsel %vm230_vm1, %v1026_v34, 0 }
  0xfa   : > { %v1027_v33 = vsel %vm1023_vm9, %v1020_v29, %v1022_v31 }
  0xfb   : > { %1243 = vmatmul.msk.bf16.vlgmr.msra.gmra.mxu1 %vm226_vm2, %v1241_v30  ;;  %v1041_v38 = vsel %vm230_vm1, %v1027_v33, 0 }
  0xff   : > { %v1016_v35 = vpop.permute.xlu0 %1015 }
 0x100   : > { %v1025_v36 = vsel %vm1023_vm9, %v1016_v35, %v1018_v28  ;;  %v1024_v37 = vsel %vm1023_vm9, %v1014_v32, %v1016_v35 }
 0x101   : > { %v1035_v40 = vsel %vm230_vm1, %v1025_v36, 0  ;;  %v1032_v41 = vsel %vm230_vm1, %v1024_v37, 0 }
 0x102   : > { %1063 = vmatpush.bf16.msra.mxu1 %v1035_v40  ;;  %1244 = vmatmul.msk.bf16.vlgmr.msra.gmra.mxu2 %vm226_vm2, %v1241_v30 }
 0x103   : > { %1245 = vmatmul.msk.bf16.vlgmr.msra.gmra.mxu3 %vm226_vm2, %v1241_v30  ;;  %1076 = vmatpush.bf16.msra.mxu2 %v1038_v39 }
 0x104   : > { %1242 = vmatmul.msk.bf16.vlgmr.msra.gmra.mxu0 %vm226_vm2, %v1241_v30  ;;  %1089 = vmatpush.bf16.msra.mxu3 %v1041_v38 }
 0x105   : > { %1050 = vmatpush.bf16.msra.mxu0 %v1032_v41 }
 0x10b   : > { %1248 = vmatmul.msk.bf16.vlgmr.msrb.gmra.mxu1 %vm226_vm2, %v1246_v44 }
 0x112   : > { %1249 = vmatmul.msk.bf16.vlgmr.msrb.gmra.mxu2 %vm226_vm2, %v1246_v44 }
 0x113   : > { %1250 = vmatmul.msk.bf16.vlgmr.msrb.gmra.mxu3 %vm226_vm2, %v1246_v44 }
 0x114   : > { %1247 = vmatmul.msk.bf16.vlgmr.msrb.gmra.mxu0 %vm226_vm2, %v1246_v44 }
 0x117   : > { %v265_v45 = vpop.f32.mrf.mxu1 }
 0x11b   : > { %1253 = vmatmul.msk.bf16.vlgmr.msra.gmra.mxu1 %vm226_vm2, %v1251_v46 }
 0x11f   : > { %v267_v48 = vpop.f32.mrf.mxu1 }
 0x121   : > { %v252_v47 = vpop.f32.mrf.mxu0 }
 0x122   : > { %1254 = vmatmul.msk.bf16.vlgmr.msra.gmra.mxu2 %vm226_vm2, %v1251_v46 }
 0x123   : > { %1255 = vmatmul.msk.bf16.vlgmr.msra.gmra.mxu3 %vm226_vm2, %v1251_v46 }
 0x124   : > { %1252 = vmatmul.msk.bf16.vlgmr.msra.gmra.mxu0 %vm226_vm2, %v1251_v46 }
 0x125   : > { %v278_v49 = vpop.f32.mrf.mxu2  ;;  %v291_v50 = vpop.f32.mrf.mxu3 }
 0x128   : > { %v334_v52 = vpop.f32.mrf.mxu1 }
 0x129   : > { %v254_v51 = vpop.f32.mrf.mxu0  ;;  %v335_v53 = vadd.f32 %v334_v52, %v265_v45 }
 0x12d   : > { %v280_v54 = vpop.f32.mrf.mxu2  ;;  %v293_v55 = vpop.f32.mrf.mxu3 }
 0x130   : > { %v336_v58 = vpop.f32.mrf.mxu1 }
 0x131   : > { %v321_v56 = vpop.f32.mrf.mxu0 }
 0x132   : > { %v322_v57 = vadd.f32 %v321_v56, %v252_v47 }
 0x135   : > { %v347_v59 = vpop.f32.mrf.mxu2 }
 0x136   : > { %v360_v60 = vpop.f32.mrf.mxu3  ;;  %v348_v61 = vadd.f32 %v347_v59, %v278_v49 }
 0x137   : > { %v361_v62 = vadd.f32 %v360_v60, %v291_v50 }
 0x138   : > { %v435_v0 = vpop.f32.mrf.mxu1 }
 0x139   : > { %v323_v63 = vpop.f32.mrf.mxu0  ;;  %v466_v1 = vadd.f32 %v435_v0, %v335_v53 }
 0x13d   : > { %v349_v2 = vpop.f32.mrf.mxu2 }
 0x13e   : > { %v362_v3 = vpop.f32.mrf.mxu3 }
 0x140   : > { %v437_v6 = vpop.f32.mrf.mxu1 }
 0x141   : > { %v422_v4 = vpop.f32.mrf.mxu0 }
 0x142   : > { %v465_v5 = vadd.f32 %v422_v4, %v322_v57 }
 0x145   : > { %v448_v7 = vpop.f32.mrf.mxu2 }
 0x146   : > { %v461_v8 = vpop.f32.mrf.mxu3  ;;  %v467_v9 = vadd.f32 %v448_v7, %v348_v61 }
 0x147   : > { %v468_v10 = vadd.f32 %v461_v8, %v361_v62  ;;  %v1103_v62 = vpop.permute.xlu1 %1102 }
 0x148   : > { %v540_v13 = vpop.f32.mrf.mxu1 }
 0x149   : > { %v424_v12 = vpop.f32.mrf.mxu0  ;;  %v571_v14 = vadd.f32 %v540_v13, %v466_v1 }
 0x14d   : > { %v450_v15 = vpop.f32.mrf.mxu2 }
 0x14e   : > { %v463_v16 = vpop.f32.mrf.mxu3 }
 0x150   : > { %v542_v19 = vpop.f32.mrf.mxu1 }
 0x151   : > { %v527_v17 = vpop.f32.mrf.mxu0 }
 0x152   : > { %v570_v18 = vadd.f32 %v527_v17, %v465_v5 }
 0x155   : > { %v553_v11 = vpop.f32.mrf.mxu2 }
 0x156   : > { %v566_v20 = vpop.f32.mrf.mxu3  ;;  %v572_v21 = vadd.f32 %v553_v11, %v467_v9 }
 0x157   : > { %v573_v22 = vadd.f32 %v566_v20, %v468_v10 }
 0x158   : > { %v645_v24 = vpop.f32.mrf.mxu1 }
 0x159   : > { %v529_v23 = vpop.f32.mrf.mxu0  ;;  %v676_v53 = vadd.f32 %v645_v24, %v571_v14 }
 0x15d   : > { %v555_v25 = vpop.f32.mrf.mxu2 }
 0x15e   : > { %v568_v26 = vpop.f32.mrf.mxu3 }
 0x160   : > { %v647_v28 = vpop.f32.mrf.mxu1 }
 0x161   : > { %v632_v27 = vpop.f32.mrf.mxu0 }
 0x162   : > { %v675_v60 = vadd.f32 %v632_v27, %v570_v18 }
 0x165   : > { %v658_v29 = vpop.f32.mrf.mxu2 }
 0x166   : > { %v671_v30 = vpop.f32.mrf.mxu3  ;;  %v677_v6 = vadd.f32 %v658_v29, %v572_v21 }
 0x167   : > { %v678_v7 = vadd.f32 %v671_v30, %v573_v22 }
 0x168   : > { %v750_v32 = vpop.f32.mrf.mxu1 }
 0x169   : > { %v634_v31 = vpop.f32.mrf.mxu0  ;;  %v781_v54 = vadd.f32 %v750_v32, %v676_v53 }
 0x16d   : > { %v660_v33 = vpop.f32.mrf.mxu2 }
 0x16e   : > { %v673_v34 = vpop.f32.mrf.mxu3 }
 0x170   : > { %v752_v36 = vpop.f32.mrf.mxu1 }
 0x171   : > { %v737_v35 = vpop.f32.mrf.mxu0 }
 0x172   : > { %v780_v0 = vadd.f32 %v737_v35, %v675_v60 }
 0x175   : > { %v763_v37 = vpop.f32.mrf.mxu2 }
 0x176   : > { %v776_v38 = vpop.f32.mrf.mxu3  ;;  %v782_v12 = vadd.f32 %v763_v37, %v677_v6 }
 0x177   : > { %v783_v13 = vadd.f32 %v776_v38, %v678_v7 }
 0x178   : > { %v855_v40 = vpop.f32.mrf.mxu1 }
 0x179   : > { %v739_v39 = vpop.f32.mrf.mxu0  ;;  %v886_v55 = vadd.f32 %v855_v40, %v781_v54 }
 0x17d   : > { %v765_v41 = vpop.f32.mrf.mxu2 }
 0x17e   : > { %v778_v42 = vpop.f32.mrf.mxu3 }
 0x180   : > { %v857_v44 = vpop.f32.mrf.mxu1 }
 0x181   : > { %v842_v43 = vpop.f32.mrf.mxu0 }
 0x182   : > { %v885_v2 = vadd.f32 %v842_v43, %v780_v0 }
 0x185   : > { %v868_v45 = vpop.f32.mrf.mxu2 }
 0x186   : > { %v881_v46 = vpop.f32.mrf.mxu3  ;;  %v887_v15 = vadd.f32 %v868_v45, %v782_v12 }
 0x187   : > { %v888_v16 = vadd.f32 %v881_v46, %v783_v13 }
 0x188   : > { %v960_v48 = vpop.f32.mrf.mxu1 }
 0x189   : > { %v844_v47 = vpop.f32.mrf.mxu0  ;;  %v991_v58 = vadd.f32 %v960_v48, %v886_v55 }
 0x18d   : > { %v870_v49 = vpop.f32.mrf.mxu2 }
 0x18e   : > { %v883_v50 = vpop.f32.mrf.mxu3 }
 0x190   : > { %v962_v52 = vpop.f32.mrf.mxu1 }
 0x191   : > { %v947_v51 = vpop.f32.mrf.mxu0 }
 0x192   : > { %v990_v3 = vadd.f32 %v947_v51, %v885_v2 }
 0x195   : > { %v973_v56 = vpop.f32.mrf.mxu2 }
 0x196   : > { %v986_v57 = vpop.f32.mrf.mxu3  ;;  %v992_v17 = vadd.f32 %v973_v56, %v887_v15 }
 0x197   : > { %v993_v18 = vadd.f32 %v986_v57, %v888_v16 }
 0x198   : > { %v1065_v61 = vpop.f32.mrf.mxu1 }
 0x199   : > { %v949_v59 = vpop.f32.mrf.mxu0  ;;  %v1096_v63 = vadd.f32 %v1065_v61, %v991_v58 }
 0x19b   : > { %v1106_v1 = vadd.f32 %v1103_v62, %v1096_v63 }
 0x19d   : > { %1110 = vst [vmem:[%s1415_s30 + $0x8] sm:$0xff] %v1106_v1  ;;  %v975_v4 = vpop.f32.mrf.mxu2 }
 0x19e   : > { %v988_v5 = vpop.f32.mrf.mxu3 }
 0x1a0   : > { %v1067_v10 = vpop.f32.mrf.mxu1 }
 0x1a1   : > { %v1052_v8 = vpop.f32.mrf.mxu0 }
 0x1a2   : > { %v1095_v9 = vadd.f32 %v1052_v8, %v990_v3 }
 0x1a4   : > { %v1105_v14 = vadd.f32 %v1103_v62, %v1095_v9 }
 0x1a5   : > { %v1078_v19 = vpop.f32.mrf.mxu2 }
 0x1a6   : > { %1109 = vst [vmem:[%s1415_s30] sm:$0xff] %v1105_v14  ;;  %v1091_v11 = vpop.f32.mrf.mxu3  ;;  %v1097_v20 = vadd.f32 %v1078_v19, %v992_v17 }
 0x1a7   : > { %v1098_v23 = vadd.f32 %v1091_v11, %v993_v18 }
 0x1a8   : > { %v1107_v21 = vadd.f32 %v1103_v62, %v1097_v20 }
 0x1a9   : > { %v1054_v24 = vpop.f32.mrf.mxu0  ;;  %v1108_v22 = vadd.f32 %v1103_v62, %v1098_v23 }
 0x1aa   : > { %1111 = vst [vmem:[%s1415_s30 + $0x10] sm:$0xff] %v1107_v21 }
 0x1ab   : > { %1112 = vst [vmem:[%s1415_s30 + $0x18] sm:$0xff] %v1108_v22 }
 0x1ad   : > { %v1080_v25 = vpop.f32.mrf.mxu2 }
 0x1ae   : > { %v1093_v26 = vpop.f32.mrf.mxu3 }
 0x1af PF: > { %s13_s16 = sadd.s32 1, %s1351_s16   ;;  %s1584_s12 = smov %s1343_s14 }
 0x1b0   : > { %p10_p7 = scmp.ge.s32.totalorder %s13_s16, 8   ;;  %s1585_s13 = smov %s1347_s15 }
 0x1b1   : > { %s1586_s14 = smov %s1589_s17  ;;  %s1587_s15 = smov %s1593_s18 }
 0x1b2   :  { %12 = sbr.rel (!%p10_p7) target bundleno = 3 (0x3), region = 104 }
 0x1b7   :  { %1143 = vsyncmov [#allocation3] }
 0x1ba   :  { %s1144_s30 = vpop.sfrf %1143 }
 0x1bb   :  { %p1258_p8 = scmp.ne.s32.totalorder %s1144_s30, 0 }
 0x1bd   :  { %1148 = shalt.err (%p1258_p8)  }

</bundles_post_ra>
